<compile_context>
chip_gen: v5e
topology: v5e:2x2
jax: 0.10.0
libtpu: 0.0.40
codegen_flags: <defaults>
</compile_context>

<pallas_src>
import jax
import jax.numpy as jnp
from jax.experimental import pallas as pl
from jax.experimental.pallas import tpu as pltpu


BN_EPS = 1e-5
LANES = 128      # lane-dense feature padding
W_IN_PAD = 32    # padded contraction dim for all linear layers (fan-in <= 20)

# v_slab row layout (each row is one 128-lane zero-padded vector):
#   0: bn0 gamma   1: bn0 beta    2: fc1 bias
#   3: bn1 gamma   4: bn1 beta    5: fc2 bias
#   6: bn2 gamma   7: bn2 beta    8: fc3 bias
#   9: bn3 gamma  10: bn3 beta   11: fc4 bias
#  12..15: zero padding (sublane alignment)


def top_model_kernel(a_ref, b_ref, w_ref, v_ref, out_ref, x_scr):
    B = x_scr.shape[0]
    inv_b = jnp.float32(1.0 / B)

    # torch.cat((a, b), dim=1), assembled lane-dense inside the kernel.
    # Pad lanes (20:128) are zero and stay exactly zero through every
    # BN (gamma=beta=0 on pads) -> ReLU -> matmul (zero weight rows/cols).
    x_scr[...] = jnp.zeros_like(x_scr)
    x_scr[:, 0:10] = a_ref[...]
    x_scr[:, 10:20] = b_ref[...]
    x = x_scr[...]                               # (B, 128)

    def bn_relu(x, g_row, b_row):
        # One-pass training-mode BatchNorm1d + ReLU, scale/shift form.
        s = jnp.sum(x, axis=0, keepdims=True)            # (1, 128)
        sq = jnp.sum(x * x, axis=0, keepdims=True)       # (1, 128)
        mu = s * inv_b
        var = jnp.maximum(sq * inv_b - mu * mu, 0.0)     # clamp cancellation
        scale = v_ref[g_row:g_row + 1, :] * jax.lax.rsqrt(var + BN_EPS)
        shift = v_ref[b_row:b_row + 1, :] - mu * scale
        return jnp.maximum(x * scale + shift, 0.0)

    def linear(x, layer, bias_row):
        # Contract only the first 32 lanes (real fan-in <= 20, rest is zero).
        return (jnp.dot(x[:, :W_IN_PAD], w_ref[layer],
                        preferred_element_type=jnp.float32)
                + v_ref[bias_row:bias_row + 1, :])

    x = bn_relu(x, 0, 1)
    x = linear(x, 0, 2)                  # 20 -> 10
    x = bn_relu(x, 3, 4)
    x = linear(x, 1, 5)                  # 10 -> 10
    x = bn_relu(x, 6, 7)
    x = linear(x, 2, 8)                  # 10 -> 10
    x = bn_relu(x, 9, 10)
    y = linear(x, 3, 11)                 # 10 -> 10
    out_ref[...] = y[:, :10]             # module output, no wrapper slice


def init_params(key):
    """Deterministic parameter init matching the PyTorch module's shapes.

    Linear weights: kaiming_normal_ (fan_in mode, gain=sqrt(2)).
    Linear biases : U(-1/sqrt(fan_in), 1/sqrt(fan_in)) (PyTorch default).
    BatchNorm     : gamma=1, beta=0 (PyTorch default).
    Weights are stored transposed, i.e. (in, out), for x @ W.
    """
    dims = [(20, 10), (10, 10), (10, 10), (10, 10)]
    params = {}
    keys = jax.random.split(key, 2 * len(dims))
    for i, (fan_in, fan_out) in enumerate(dims):
        kw, kb = keys[2 * i], keys[2 * i + 1]
        std = (2.0 / fan_in) ** 0.5
        params[f"w{i+1}"] = std * jax.random.normal(kw, (fan_in, fan_out), jnp.float32)
        bound = 1.0 / (fan_in ** 0.5)
        params[f"b{i+1}"] = jax.random.uniform(
            kb, (fan_out,), jnp.float32, minval=-bound, maxval=bound)
    for i, nf in enumerate([20, 10, 10, 10]):
        params[f"g{i}"] = jnp.ones((nf,), jnp.float32)
        params[f"be{i}"] = jnp.zeros((nf,), jnp.float32)
    return params


def pack_params(params):
    """Pack the 16 tiny parameter tensors into two zero-padded slabs.

    w_slab: (4, 32, 128) f32 — weights stored (in, out), fan-in padded to 32.
    v_slab: (16, 128)    f32 — gammas / betas / biases, one padded row each.
    """
    in_dims = [20, 10, 10, 10]
    w_slab = jnp.zeros((4, W_IN_PAD, LANES), jnp.float32)
    for i in range(4):
        w = params[f"w{i+1}"]                       # (in, 10)
        w_slab = w_slab.at[i, :in_dims[i], :10].set(w)

    row_defs = [
        ("g0", 20), ("be0", 20), ("b1", 10),
        ("g1", 10), ("be1", 10), ("b2", 10),
        ("g2", 10), ("be2", 10), ("b3", 10),
        ("g3", 10), ("be3", 10), ("b4", 10),
    ]
    v_slab = jnp.zeros((16, LANES), jnp.float32)
    for r, (name, nf) in enumerate(row_defs):
        v_slab = v_slab.at[r, :nf].set(params[name])
    return w_slab, v_slab


@jax.jit
def top_model_forward(a, b, w_slab, v_slab):
    """Full forward pass: the pallas_call IS the jitted graph (no pre/post ops)."""
    B = a.shape[0]
    return pl.pallas_call(
        top_model_kernel,
        out_shape=jax.ShapeDtypeStruct((B, 10), jnp.float32),
        in_specs=[pl.BlockSpec(memory_space=pltpu.VMEM)] * 4,
        out_specs=pl.BlockSpec(memory_space=pltpu.VMEM),
        scratch_shapes=[pltpu.VMEM((B, LANES), jnp.float32)],
    )(a, b, w_slab, v_slab)


def reference_forward(a, b, params):
    """Pure-JAX reference (unpacked params) for a sanity check."""
    def bn(x, g, be):
        mu = jnp.mean(x, axis=0, keepdims=True)
        var = jnp.mean((x - mu) ** 2, axis=0, keepdims=True)
        return (x - mu) / jnp.sqrt(var + BN_EPS) * g + be

    x = jnp.concatenate([a, b], axis=1)
    x = jax.nn.relu(bn(x, params["g0"], params["be0"]))
    x = x @ params["w1"] + params["b1"]
    x = jax.nn.relu(bn(x, params["g1"], params["be1"]))
    x = x @ params["w2"] + params["b2"]
    x = jax.nn.relu(bn(x, params["g2"], params["be2"]))
    x = x @ params["w3"] + params["b3"]
    x = jax.nn.relu(bn(x, params["g3"], params["be3"]))
    return x @ params["w4"] + params["b4"]


if __name__ == "__main__":
    key = jax.random.PRNGKey(0)
    k_a, k_b, k_p = jax.random.split(key, 3)

    B = 8  # batch size (training-mode BN needs B >= 2)
    a = jax.random.normal(k_a, (B, 10), jnp.float32)  # bottom model A output
    b = jax.random.normal(k_b, (B, 10), jnp.float32)  # bottom model B output
    params = init_params(k_p)
    w_slab, v_slab = pack_params(params)

    out = top_model_forward(a, b, w_slab, v_slab)
    out = jax.block_until_ready(out)

    ref = reference_forward(a, b, params)
    assert out.shape == (B, 10)
    assert jnp.allclose(out, ref, atol=1e-4, rtol=1e-4), "mismatch vs reference"

    print("KERNEL_OK")
</pallas_src>

<mosaic_0001>
module attributes {stable_mosaic.version = 11 : i64} {
  func.func @top_model_kernel(%arg0: memref<8x10xf32, #tpu.memory_space<vmem>>, %arg1: memref<8x10xf32, #tpu.memory_space<vmem>>, %arg2: memref<4x32x128xf32, #tpu.memory_space<vmem>>, %arg3: memref<16x128xf32, #tpu.memory_space<vmem>>, %arg4: memref<8x10xf32, #tpu.memory_space<vmem>>, %arg5: memref<8x128xf32, #tpu.memory_space<vmem>>) attributes {dimension_semantics = [], scalar_prefetch = 0 : i64, scratch_operands = 1 : i64, tpu.core_type = #tpu.core_type<tc>} {
    %cst = arith.constant 0.000000e+00 : f32
    %0 = vector.broadcast %cst : f32 to vector<8x128xf32>
    %c0 = arith.constant 0 : index
    %c0_0 = arith.constant 0 : index
    %1 = vector.load %arg5[%c0, %c0_0] : memref<8x128xf32, #tpu.memory_space<vmem>>, vector<8x128xf32>
    tpu.vector_store %arg5[%c0, %c0_0], %0 {strides = array<i32>} : memref<8x128xf32, #tpu.memory_space<vmem>>, vector<8x128xf32>,
    %c0_1 = arith.constant 0 : index
    %c0_2 = arith.constant 0 : index
    %2 = vector.load %arg0[%c0_1, %c0_2] : memref<8x10xf32, #tpu.memory_space<vmem>>, vector<8x10xf32>
    %c0_3 = arith.constant 0 : index
    %c0_4 = arith.constant 0 : index
    %3 = vector.load %arg5[%c0_3, %c0_4] : memref<8x128xf32, #tpu.memory_space<vmem>>, vector<8x10xf32>
    tpu.vector_store %arg5[%c0_3, %c0_4], %2 {strides = array<i32>} : memref<8x128xf32, #tpu.memory_space<vmem>>, vector<8x10xf32>,
    %c0_5 = arith.constant 0 : index
    %c0_6 = arith.constant 0 : index
    %4 = vector.load %arg1[%c0_5, %c0_6] : memref<8x10xf32, #tpu.memory_space<vmem>>, vector<8x10xf32>
    %c0_7 = arith.constant 0 : index
    %c10 = arith.constant 10 : index
    %5 = vector.load %arg5[%c0_7, %c10] : memref<8x128xf32, #tpu.memory_space<vmem>>, vector<8x10xf32>
    tpu.vector_store %arg5[%c0_7, %c10], %4 {strides = array<i32>} : memref<8x128xf32, #tpu.memory_space<vmem>>, vector<8x10xf32>,
    %c0_8 = arith.constant 0 : index
    %c0_9 = arith.constant 0 : index
    %6 = vector.load %arg5[%c0_8, %c0_9] : memref<8x128xf32, #tpu.memory_space<vmem>>, vector<8x128xf32>
    %cst_10 = arith.constant dense<0.000000e+00> : vector<128xf32>
    %7 = vector.multi_reduction <add>, %6, %cst_10 [0] : vector<8x128xf32> to vector<128xf32>
    %8 = vector.shape_cast %7 : vector<128xf32> to vector<1x128xf32>
    %9 = arith.mulf %6, %6 : vector<8x128xf32>
    %cst_11 = arith.constant dense<0.000000e+00> : vector<128xf32>
    %10 = vector.multi_reduction <add>, %9, %cst_11 [0] : vector<8x128xf32> to vector<128xf32>
    %11 = vector.shape_cast %10 : vector<128xf32> to vector<1x128xf32>
    %cst_12 = arith.constant 1.250000e-01 : f32
    %12 = vector.broadcast %cst_12 : f32 to vector<1x128xf32>
    %13 = arith.mulf %8, %12 : vector<1x128xf32>
    %cst_13 = arith.constant 1.250000e-01 : f32
    %14 = vector.broadcast %cst_13 : f32 to vector<1x128xf32>
    %15 = arith.mulf %11, %14 : vector<1x128xf32>
    %16 = arith.mulf %13, %13 : vector<1x128xf32>
    %17 = arith.subf %15, %16 : vector<1x128xf32>
    %cst_14 = arith.constant 0.000000e+00 : f32
    %18 = vector.broadcast %cst_14 : f32 to vector<1x128xf32>
    %19 = arith.maximumf %17, %18 : vector<1x128xf32>
    %c0_15 = arith.constant 0 : index
    %c0_16 = arith.constant 0 : index
    %20 = vector.load %arg3[%c0_15, %c0_16] : memref<16x128xf32, #tpu.memory_space<vmem>>, vector<1x128xf32>
    %cst_17 = arith.constant 9.99999974E-6 : f32
    %21 = vector.broadcast %cst_17 : f32 to vector<1x128xf32>
    %22 = arith.addf %19, %21 : vector<1x128xf32>
    %23 = math.rsqrt %22 : vector<1x128xf32>
    %24 = arith.mulf %20, %23 : vector<1x128xf32>
    %c1 = arith.constant 1 : index
    %c0_18 = arith.constant 0 : index
    %25 = vector.load %arg3[%c1, %c0_18] : memref<16x128xf32, #tpu.memory_space<vmem>>, vector<1x128xf32>
    %26 = arith.mulf %13, %24 : vector<1x128xf32>
    %27 = arith.subf %25, %26 : vector<1x128xf32>
    %28 = vector.broadcast %24 : vector<1x128xf32> to vector<8x128xf32>
    %29 = arith.mulf %6, %28 : vector<8x128xf32>
    %30 = vector.broadcast %27 : vector<1x128xf32> to vector<8x128xf32>
    %31 = arith.addf %29, %30 : vector<8x128xf32>
    %cst_19 = arith.constant 0.000000e+00 : f32
    %32 = vector.broadcast %cst_19 : f32 to vector<8x128xf32>
    %33 = arith.maximumf %31, %32 : vector<8x128xf32>
    %34 = vector.extract_strided_slice %33 {offsets = [0, 0], sizes = [8, 32], strides = [1, 1]} : vector<8x128xf32> to vector<8x32xf32>
    %c0_20 = arith.constant 0 : index
    %c0_21 = arith.constant 0 : index
    %c0_22 = arith.constant 0 : index
    %35 = vector.load %arg2[%c0_20, %c0_21, %c0_22] : memref<4x32x128xf32, #tpu.memory_space<vmem>>, vector<1x32x128xf32>
    %36 = vector.shape_cast %35 : vector<1x32x128xf32> to vector<32x128xf32>
    %cst_23 = arith.constant dense<0.000000e+00> : vector<8x128xf32>
    %37 = tpu.matmul %34, %36, %cst_23 {dimension_numbers = #tpu.dot_dimension_numbers<[1], [0], [0], [1], [0, 0, 1, 1], [], []>} : vector<8x32xf32>, vector<32x128xf32>, vector<8x128xf32> -> vector<8x128xf32>
    %c2 = arith.constant 2 : index
    %c0_24 = arith.constant 0 : index
    %38 = vector.load %arg3[%c2, %c0_24] : memref<16x128xf32, #tpu.memory_space<vmem>>, vector<1x128xf32>
    %39 = vector.broadcast %38 : vector<1x128xf32> to vector<8x128xf32>
    %40 = arith.addf %37, %39 : vector<8x128xf32>
    %cst_25 = arith.constant dense<0.000000e+00> : vector<128xf32>
    %41 = vector.multi_reduction <add>, %40, %cst_25 [0] : vector<8x128xf32> to vector<128xf32>
    %42 = vector.shape_cast %41 : vector<128xf32> to vector<1x128xf32>
    %43 = arith.mulf %40, %40 : vector<8x128xf32>
    %cst_26 = arith.constant dense<0.000000e+00> : vector<128xf32>
    %44 = vector.multi_reduction <add>, %43, %cst_26 [0] : vector<8x128xf32> to vector<128xf32>
    %45 = vector.shape_cast %44 : vector<128xf32> to vector<1x128xf32>
    %cst_27 = arith.constant 1.250000e-01 : f32
    %46 = vector.broadcast %cst_27 : f32 to vector<1x128xf32>
    %47 = arith.mulf %42, %46 : vector<1x128xf32>
    %cst_28 = arith.constant 1.250000e-01 : f32
    %48 = vector.broadcast %cst_28 : f32 to vector<1x128xf32>
    %49 = arith.mulf %45, %48 : vector<1x128xf32>
    %50 = arith.mulf %47, %47 : vector<1x128xf32>
    %51 = arith.subf %49, %50 : vector<1x128xf32>
    %cst_29 = arith.constant 0.000000e+00 : f32
    %52 = vector.broadcast %cst_29 : f32 to vector<1x128xf32>
    %53 = arith.maximumf %51, %52 : vector<1x128xf32>
    %c3 = arith.constant 3 : index
    %c0_30 = arith.constant 0 : index
    %54 = vector.load %arg3[%c3, %c0_30] : memref<16x128xf32, #tpu.memory_space<vmem>>, vector<1x128xf32>
    %cst_31 = arith.constant 9.99999974E-6 : f32
    %55 = vector.broadcast %cst_31 : f32 to vector<1x128xf32>
    %56 = arith.addf %53, %55 : vector<1x128xf32>
    %57 = math.rsqrt %56 : vector<1x128xf32>
    %58 = arith.mulf %54, %57 : vector<1x128xf32>
    %c4 = arith.constant 4 : index
    %c0_32 = arith.constant 0 : index
    %59 = vector.load %arg3[%c4, %c0_32] : memref<16x128xf32, #tpu.memory_space<vmem>>, vector<1x128xf32>
    %60 = arith.mulf %47, %58 : vector<1x128xf32>
    %61 = arith.subf %59, %60 : vector<1x128xf32>
    %62 = vector.broadcast %58 : vector<1x128xf32> to vector<8x128xf32>
    %63 = arith.mulf %40, %62 : vector<8x128xf32>
    %64 = vector.broadcast %61 : vector<1x128xf32> to vector<8x128xf32>
    %65 = arith.addf %63, %64 : vector<8x128xf32>
    %cst_33 = arith.constant 0.000000e+00 : f32
    %66 = vector.broadcast %cst_33 : f32 to vector<8x128xf32>
    %67 = arith.maximumf %65, %66 : vector<8x128xf32>
    %68 = vector.extract_strided_slice %67 {offsets = [0, 0], sizes = [8, 32], strides = [1, 1]} : vector<8x128xf32> to vector<8x32xf32>
    %c1_34 = arith.constant 1 : index
    %c0_35 = arith.constant 0 : index
    %c0_36 = arith.constant 0 : index
    %69 = vector.load %arg2[%c1_34, %c0_35, %c0_36] : memref<4x32x128xf32, #tpu.memory_space<vmem>>, vector<1x32x128xf32>
    %70 = vector.shape_cast %69 : vector<1x32x128xf32> to vector<32x128xf32>
    %cst_37 = arith.constant dense<0.000000e+00> : vector<8x128xf32>
    %71 = tpu.matmul %68, %70, %cst_37 {dimension_numbers = #tpu.dot_dimension_numbers<[1], [0], [0], [1], [0, 0, 1, 1], [], []>} : vector<8x32xf32>, vector<32x128xf32>, vector<8x128xf32> -> vector<8x128xf32>
    %c5 = arith.constant 5 : index
    %c0_38 = arith.constant 0 : index
    %72 = vector.load %arg3[%c5, %c0_38] : memref<16x128xf32, #tpu.memory_space<vmem>>, vector<1x128xf32>
    %73 = vector.broadcast %72 : vector<1x128xf32> to vector<8x128xf32>
    %74 = arith.addf %71, %73 : vector<8x128xf32>
    %cst_39 = arith.constant dense<0.000000e+00> : vector<128xf32>
    %75 = vector.multi_reduction <add>, %74, %cst_39 [0] : vector<8x128xf32> to vector<128xf32>
    %76 = vector.shape_cast %75 : vector<128xf32> to vector<1x128xf32>
    %77 = arith.mulf %74, %74 : vector<8x128xf32>
    %cst_40 = arith.constant dense<0.000000e+00> : vector<128xf32>
    %78 = vector.multi_reduction <add>, %77, %cst_40 [0] : vector<8x128xf32> to vector<128xf32>
    %79 = vector.shape_cast %78 : vector<128xf32> to vector<1x128xf32>
    %cst_41 = arith.constant 1.250000e-01 : f32
    %80 = vector.broadcast %cst_41 : f32 to vector<1x128xf32>
    %81 = arith.mulf %76, %80 : vector<1x128xf32>
    %cst_42 = arith.constant 1.250000e-01 : f32
    %82 = vector.broadcast %cst_42 : f32 to vector<1x128xf32>
    %83 = arith.mulf %79, %82 : vector<1x128xf32>
    %84 = arith.mulf %81, %81 : vector<1x128xf32>
    %85 = arith.subf %83, %84 : vector<1x128xf32>
    %cst_43 = arith.constant 0.000000e+00 : f32
    %86 = vector.broadcast %cst_43 : f32 to vector<1x128xf32>
    %87 = arith.maximumf %85, %86 : vector<1x128xf32>
    %c6 = arith.constant 6 : index
    %c0_44 = arith.constant 0 : index
    %88 = vector.load %arg3[%c6, %c0_44] : memref<16x128xf32, #tpu.memory_space<vmem>>, vector<1x128xf32>
    %cst_45 = arith.constant 9.99999974E-6 : f32
    %89 = vector.broadcast %cst_45 : f32 to vector<1x128xf32>
    %90 = arith.addf %87, %89 : vector<1x128xf32>
    %91 = math.rsqrt %90 : vector<1x128xf32>
    %92 = arith.mulf %88, %91 : vector<1x128xf32>
    %c7 = arith.constant 7 : index
    %c0_46 = arith.constant 0 : index
    %93 = vector.load %arg3[%c7, %c0_46] : memref<16x128xf32, #tpu.memory_space<vmem>>, vector<1x128xf32>
    %94 = arith.mulf %81, %92 : vector<1x128xf32>
    %95 = arith.subf %93, %94 : vector<1x128xf32>
    %96 = vector.broadcast %92 : vector<1x128xf32> to vector<8x128xf32>
    %97 = arith.mulf %74, %96 : vector<8x128xf32>
    %98 = vector.broadcast %95 : vector<1x128xf32> to vector<8x128xf32>
    %99 = arith.addf %97, %98 : vector<8x128xf32>
    %cst_47 = arith.constant 0.000000e+00 : f32
    %100 = vector.broadcast %cst_47 : f32 to vector<8x128xf32>
    %101 = arith.maximumf %99, %100 : vector<8x128xf32>
    %102 = vector.extract_strided_slice %101 {offsets = [0, 0], sizes = [8, 32], strides = [1, 1]} : vector<8x128xf32> to vector<8x32xf32>
    %c2_48 = arith.constant 2 : index
    %c0_49 = arith.constant 0 : index
    %c0_50 = arith.constant 0 : index
    %103 = vector.load %arg2[%c2_48, %c0_49, %c0_50] : memref<4x32x128xf32, #tpu.memory_space<vmem>>, vector<1x32x128xf32>
    %104 = vector.shape_cast %103 : vector<1x32x128xf32> to vector<32x128xf32>
    %cst_51 = arith.constant dense<0.000000e+00> : vector<8x128xf32>
    %105 = tpu.matmul %102, %104, %cst_51 {dimension_numbers = #tpu.dot_dimension_numbers<[1], [0], [0], [1], [0, 0, 1, 1], [], []>} : vector<8x32xf32>, vector<32x128xf32>, vector<8x128xf32> -> vector<8x128xf32>
    %c8 = arith.constant 8 : index
    %c0_52 = arith.constant 0 : index
    %106 = vector.load %arg3[%c8, %c0_52] : memref<16x128xf32, #tpu.memory_space<vmem>>, vector<1x128xf32>
    %107 = vector.broadcast %106 : vector<1x128xf32> to vector<8x128xf32>
    %108 = arith.addf %105, %107 : vector<8x128xf32>
    %cst_53 = arith.constant dense<0.000000e+00> : vector<128xf32>
    %109 = vector.multi_reduction <add>, %108, %cst_53 [0] : vector<8x128xf32> to vector<128xf32>
    %110 = vector.shape_cast %109 : vector<128xf32> to vector<1x128xf32>
    %111 = arith.mulf %108, %108 : vector<8x128xf32>
    %cst_54 = arith.constant dense<0.000000e+00> : vector<128xf32>
    %112 = vector.multi_reduction <add>, %111, %cst_54 [0] : vector<8x128xf32> to vector<128xf32>
    %113 = vector.shape_cast %112 : vector<128xf32> to vector<1x128xf32>
    %cst_55 = arith.constant 1.250000e-01 : f32
    %114 = vector.broadcast %cst_55 : f32 to vector<1x128xf32>
    %115 = arith.mulf %110, %114 : vector<1x128xf32>
    %cst_56 = arith.constant 1.250000e-01 : f32
    %116 = vector.broadcast %cst_56 : f32 to vector<1x128xf32>
    %117 = arith.mulf %113, %116 : vector<1x128xf32>
    %118 = arith.mulf %115, %115 : vector<1x128xf32>
    %119 = arith.subf %117, %118 : vector<1x128xf32>
    %cst_57 = arith.constant 0.000000e+00 : f32
    %120 = vector.broadcast %cst_57 : f32 to vector<1x128xf32>
    %121 = arith.maximumf %119, %120 : vector<1x128xf32>
    %c9 = arith.constant 9 : index
    %c0_58 = arith.constant 0 : index
    %122 = vector.load %arg3[%c9, %c0_58] : memref<16x128xf32, #tpu.memory_space<vmem>>, vector<1x128xf32>
    %cst_59 = arith.constant 9.99999974E-6 : f32
    %123 = vector.broadcast %cst_59 : f32 to vector<1x128xf32>
    %124 = arith.addf %121, %123 : vector<1x128xf32>
    %125 = math.rsqrt %124 : vector<1x128xf32>
    %126 = arith.mulf %122, %125 : vector<1x128xf32>
    %c10_60 = arith.constant 10 : index
    %c0_61 = arith.constant 0 : index
    %127 = vector.load %arg3[%c10_60, %c0_61] : memref<16x128xf32, #tpu.memory_space<vmem>>, vector<1x128xf32>
    %128 = arith.mulf %115, %126 : vector<1x128xf32>
    %129 = arith.subf %127, %128 : vector<1x128xf32>
    %130 = vector.broadcast %126 : vector<1x128xf32> to vector<8x128xf32>
    %131 = arith.mulf %108, %130 : vector<8x128xf32>
    %132 = vector.broadcast %129 : vector<1x128xf32> to vector<8x128xf32>
    %133 = arith.addf %131, %132 : vector<8x128xf32>
    %cst_62 = arith.constant 0.000000e+00 : f32
    %134 = vector.broadcast %cst_62 : f32 to vector<8x128xf32>
    %135 = arith.maximumf %133, %134 : vector<8x128xf32>
    %136 = vector.extract_strided_slice %135 {offsets = [0, 0], sizes = [8, 32], strides = [1, 1]} : vector<8x128xf32> to vector<8x32xf32>
    %c3_63 = arith.constant 3 : index
    %c0_64 = arith.constant 0 : index
    %c0_65 = arith.constant 0 : index
    %137 = vector.load %arg2[%c3_63, %c0_64, %c0_65] : memref<4x32x128xf32, #tpu.memory_space<vmem>>, vector<1x32x128xf32>
    %138 = vector.shape_cast %137 : vector<1x32x128xf32> to vector<32x128xf32>
    %cst_66 = arith.constant dense<0.000000e+00> : vector<8x128xf32>
    %139 = tpu.matmul %136, %138, %cst_66 {dimension_numbers = #tpu.dot_dimension_numbers<[1], [0], [0], [1], [0, 0, 1, 1], [], []>} : vector<8x32xf32>, vector<32x128xf32>, vector<8x128xf32> -> vector<8x128xf32>
    %c11 = arith.constant 11 : index
    %c0_67 = arith.constant 0 : index
    %140 = vector.load %arg3[%c11, %c0_67] : memref<16x128xf32, #tpu.memory_space<vmem>>, vector<1x128xf32>
    %141 = vector.broadcast %140 : vector<1x128xf32> to vector<8x128xf32>
    %142 = arith.addf %139, %141 : vector<8x128xf32>
    %143 = vector.extract_strided_slice %142 {offsets = [0, 0], sizes = [8, 10], strides = [1, 1]} : vector<8x128xf32> to vector<8x10xf32>
    %c0_68 = arith.constant 0 : index
    %c0_69 = arith.constant 0 : index
    %144 = vector.load %arg4[%c0_68, %c0_69] : memref<8x10xf32, #tpu.memory_space<vmem>>, vector<8x10xf32>
    tpu.vector_store %arg4[%c0_68, %c0_69], %143 {strides = array<i32>} : memref<8x10xf32, #tpu.memory_space<vmem>>, vector<8x10xf32>,
    return
  }
}

</mosaic_0001>

<bundles_post_ra>
// kernel: top_model_forward.1
= control target key start
LH: loop header
LB: loop body
LE: loop exit
PB: predicated region body
PF: predicated region fallthrough
CT: control target
= control target key end

     0   :  { %9 = vsyncpa [#allocation4], 0  ;;  %s593_s0 = inlined_call_operand.hbm [shape: f32[8,10], index: 0, kind: input, shape index: {}]   ;;  %s594_s1 = inlined_call_operand.hbm [shape: f32[8,10], index: 1, kind: input, shape index: {}]   ;;  %s595_s2 = inlined_call_operand.hbm [shape: f32[4,32,128], index: 2, kind: input, shape index: {}]   ;;  %s596_s3 = inlined_call_operand.hbm [shape: f32[16,128], index: 3, kind: input, shape index: {}]   ;;  %s597_s4 = inlined_call_operand.hbm [shape: f32[8,10], index: 4, kind: output, shape index: {}]  }
   0x1   :  { %10 = vsyncpa [#allocation7], 0 }
   0x2   :  { %11 = vsyncpa [#allocation10], 0  ;;  %s29_s17 = sshll.u32 %s594_s1, 4  ;;  %s30_s17 = int_to_ptr.hbm [resolvable:$true] %s29_s17 }
   0x3   :  { %12 = vsyncpa [#allocation5], 0  ;;  %s538_s18 = smov [#allocation6]   ;;  %s18_s22 = sshll.u32 %s593_s0, 4  ;;  %s19_s22 = int_to_ptr.hbm [resolvable:$true] %s18_s22 }
   0x4   :  { %s31_s19 = sshll.u32 %s538_s18, 4  ;;  %s539_s23 = smov [#allocation3]   ;;  %s32_s19 = int_to_ptr.vmem [resolvable:$true] %s31_s19 }
   0x5   :  { %34 = dma.hbm_to_vmem [thread:$0]  %s30_s17, 128, %s32_s19, [#allocation7]  }
   0x6   :  { %s20_s24 = sshll.u32 %s539_s23, 4  ;;  %s39_s27 = sshll.u32 %s595_s2, 4  ;;  %s21_s24 = int_to_ptr.vmem [resolvable:$true] %s20_s24  ;;  %s40_s27 = int_to_ptr.hbm [resolvable:$true] %s39_s27 }
   0x7   :  { %23 = dma.hbm_to_vmem [thread:$0]  %s19_s22, 128, %s21_s24, [#allocation4]  }
   0x8   :  { %s540_s1 = smov [#allocation8]   ;;  %s52_s5 = sshll.u32 %s596_s3, 4  ;;  %s53_s5 = int_to_ptr.hbm [resolvable:$true] %s52_s5 }
   0x9   :  { %s41_s28 = sshll.u32 %s540_s1, 4  ;;  %s541_s6 = smov 128   ;;  %s42_s28 = int_to_ptr.vmem [resolvable:$true] %s41_s28 }
   0xa   :  { %s542_s0 = smov 8   ;;  %s543_s7 = smov [#allocation9]  }
   0xb   :  { %47 = dma.hbm_to_vmem [thread:$0]  %s40_s27, 2048, %s42_s28, [#allocation7], %s541_s6, %s541_s6, %s542_s0  }
   0xc   :  { %s54_s8 = sshll.u32 %s543_s7, 4  ;;  %s55_s8 = int_to_ptr.vmem [resolvable:$true] %s54_s8 }
   0xd   :  { %60 = dma.hbm_to_vmem [thread:$0]  %s53_s5, 256, %s55_s8, [#allocation10], %s541_s6, %s541_s6, %s542_s0  }
   0xe   :  { %530 = dma.done.wait [#allocation4], 128  }
   0xf   :  { %531 = vsyncadd [#allocation4], 4294967168 }
  0x10   :  { %532 = dma.done.wait [#allocation7], 2176  }
  0x11   :  { %533 = vsyncadd [#allocation7], 4294965120 }
  0x12   :  { %534 = dma.done.wait [#allocation10], 256  }
  0x13   :  { %535 = vsyncadd [#allocation10], 4294967040  ;;  %v544_v0 = vmov 0.0   ;;  %vm79_vm0 = vcmask 80896   ;;  %v81_v1 = vld [vmem:[#allocation6] sm:$0xff]  ;;  %v78_v2 = vld [vmem:[#allocation3] sm:$0xff] }
  0x14   :  { %77 = vst [vmem:[#allocation2] sm:$0xff] %v544_v0  ;;  %s545_s2 = smov 10   ;;  %v131_v3 = vld [vmem:[#allocation8 + $0x18] sm:$0xff]  ;;  %v130_v4 = vld [vmem:[#allocation8 + $0x10] sm:$0xff]  ;;  %v129_v5 = vld [vmem:[#allocation8 + $0x8] sm:$0xff]  ;;  %vm86_vm1 = vcmask 162896  }
  0x15   :  { %83 = vrot.lane.b32.xlu0 %v81_v1, %s545_s2  ;;  %80 = vst.msk [vmem:[#allocation2] sm:$0xff] %vm79_vm0, %v78_v2  ;;  %150 = vmatpush.msra.mxu0 %v131_v3  ;;  %v128_v6 = vld [vmem:[#allocation8] sm:$0xff]  ;;  %vm134_vm5 = vcmask 261120   ;;  %v201_v45 = vld [vmem:[#allocation8 + $0x38] sm:$0xff]  ;;  %v200_v46 = vld [vmem:[#allocation8 + $0x30] sm:$0xff]  ;;  %s546_s3 = smov [#allocation11]  }
  0x16   :  { %v107_v33 = vld [vmem:[#allocation9] sm:$0x1]  ;;  %v120_v37 = vld [vmem:[#allocation9 + $0x1] sm:$0x1]  ;;  %219 = vmatpush.msra.mxu1 %v201_v45  ;;  %v199_v47 = vld [vmem:[#allocation8 + $0x28] sm:$0xff]  ;;  %s371_s9 = sshll.u32 %s546_s3, 4  ;;  %s372_s9 = int_to_ptr.vmem [resolvable:$true] %s371_s9 }
  0x17   :  { %151 = vmatpush.msra.mxu0 %v130_v4  ;;  %v198_v48 = vld [vmem:[#allocation8 + $0x20] sm:$0xff]  ;;  %s373_s12 = sshll.u32 %s597_s4, 4  ;;  %s374_s12 = int_to_ptr.hbm [resolvable:$true] %s373_s12 }
  0x18   :  { %220 = vmatpush.msra.mxu1 %v200_v46  ;;  %v398_v49 = vld [vmem:[#allocation9 + $0x2] ss:$0 sm:$0xff] }
  0x19   :  { %152 = vmatpush.msra.mxu0 %v129_v5 }
  0x1a   :  { %221 = vmatpush.msra.mxu1 %v199_v47 }
  0x1b   :  { %153 = vmatpush.msra.mxu0 %v128_v6 }
  0x1c   :  { %222 = vmatpush.msra.mxu1 %v198_v48 }
  0x87   :  { %v84_v7 = vpop.permute.xlu0 %83 }
  0x88   :  { %87 = vst.msk [vmem:[#allocation2] sm:$0xff] %vm86_vm1, %v84_v7 }
  0x8f   :  { %v88_v8 = vld [vmem:[#allocation2] sm:$0xff] }
  0x90   :  { %v89_v9 = vrot.slane %v88_v8, 4  ;;  %v95_v10 = vmul.f32 %v88_v8, %v88_v8 }
  0x92   :  { %v90_v11 = vadd.f32 %v89_v9, %v88_v8  ;;  %v96_v12 = vrot.slane %v95_v10, 4 }
  0x94   :  { %v91_v13 = vrot.slane %v90_v11, 2  ;;  %v97_v14 = vadd.f32 %v96_v12, %v95_v10  ;;  %v176_v12 = vld [vmem:[#allocation9 + $0x3] sm:$0x1] }
  0x96   :  { %v92_v15 = vadd.f32 %v91_v13, %v90_v11  ;;  %v98_v16 = vrot.slane %v97_v14, 2 }
  0x98   :  { %v93_v17 = vrot.slane %v92_v15, 1  ;;  %v99_v18 = vadd.f32 %v98_v16, %v97_v14  ;;  %v189_v16 = vld [vmem:[#allocation9 + $0x4] sm:$0x1] }
  0x9a   :  { %v94_v19 = vadd.f32 %v93_v17, %v92_v15  ;;  %v100_v20 = vrot.slane %v99_v18, 1 }
  0x9c   :  { %v101_v21 = vadd.f32 %v100_v20, %v99_v18  ;;  %v102_v22 = vmul.f32 0.125, %v94_v19 }
  0x9e   :  { %v103_v23 = vmul.f32 0.125, %v101_v21  ;;  %v104_v24 = vmul.f32 %v102_v22, %v102_v22 }
  0xa0   :  { %v105_v25 = vsub.f32 %v103_v23, %v104_v24  ;;  %v270_v24 = vld [vmem:[#allocation8 + $0x58] sm:$0xff] }
  0xa1   :  { %288 = vmatpush.msra.mxu2 %v270_v24 }
  0xa2   :  { %v106_v26 = vmax.f32 %v105_v25, 0.0  ;;  %v269_v25 = vld [vmem:[#allocation8 + $0x50] sm:$0xff] }
  0xa3   :  { %289 = vmatpush.msra.mxu2 %v269_v25 }
  0xa4   :  { %v108_v27 = vadd.f32 1e-05, %v106_v26  ;;  %v268_v26 = vld [vmem:[#allocation8 + $0x48] sm:$0xff] }
  0xa5   :  { %290 = vmatpush.msra.mxu2 %v268_v26 }
  0xa6   :  { %402 = vrsqrt.f32 %v108_v27  ;;  %vm115_vm3 = vweird.f32 %v108_v27 }
  0xac   :  { %v403_v28 = vpop.eup %402 }
  0xad   :  { %v110_v29 = vmul.f32 %v403_v28, %v108_v27  ;;  %vm116_vm2 = vweird.f32 %v403_v28  ;;  %v267_v27 = vld [vmem:[#allocation8 + $0x40] sm:$0xff] }
  0xae   :  { %vm117_vm4 = vmor %vm115_vm3, %vm116_vm2  ;;  %291 = vmatpush.msra.mxu2 %v267_v27 }
  0xaf   :  { %v111_v30 = vmul.f32 %v403_v28, %v110_v29 }
  0xb1   :  { %v112_v31 = vmul.f32 0.5, %v111_v30 }
  0xb3   :  { %v113_v32 = vsub.f32 1.5, %v112_v31 }
  0xb5   :  { %v114_v34 = vmul.f32 %v403_v28, %v113_v32 }
  0xb7   :  { %v118_v35 = vsel %vm117_vm4, %v403_v28, %v114_v34  ;;  %v399_v28 = vld [vmem:[#allocation9 + $0x5] ss:$0 sm:$0xff] }
  0xb8   :  { %v119_v36 = vmul.f32 %v118_v35, %v107_v33 }
  0xba   :  { %v121_v38 = vmul.f32 %v119_v36, %v102_v22  ;;  %v123_v39 = vperm.slane %v119_v36, 0 }
  0xbc   :  { %v122_v40 = vsub.f32 %v120_v37, %v121_v38  ;;  %v124_v41 = vmul.f32 %v123_v39, %v88_v8 }
  0xbe   :  { %v125_v42 = vperm.slane %v122_v40, 0 }
  0xc0   :  { %v126_v43 = vadd.f32 %v125_v42, %v124_v41 }
  0xc2   :  { %v127_v44 = vmax.f32 %v126_v43, 0.0 }
  0xc4   :  { %385 = vmatmul.msk.f32.vlgmr.msra.gmra.mxu0 %vm134_vm5, %v127_v44 }
 0x141   :  { %v155_v50 = vpop.f32.mrf.mxu0 }
 0x142   :  { %v156_v51 = vadd.f32 %v398_v49, %v155_v50 }
 0x144   :  { %v158_v52 = vrot.slane %v156_v51, 4  ;;  %v164_v53 = vmul.f32 %v156_v51, %v156_v51 }
 0x146   :  { %v159_v54 = vadd.f32 %v158_v52, %v156_v51  ;;  %v165_v55 = vrot.slane %v164_v53, 4 }
 0x148   :  { %v160_v56 = vrot.slane %v159_v54, 2  ;;  %v166_v57 = vadd.f32 %v165_v55, %v164_v53  ;;  %v245_v55 = vld [vmem:[#allocation9 + $0x6] sm:$0x1] }
 0x14a   :  { %v161_v58 = vadd.f32 %v160_v56, %v159_v54  ;;  %v167_v59 = vrot.slane %v166_v57, 2 }
 0x14c   :  { %v162_v60 = vrot.slane %v161_v58, 1  ;;  %v168_v61 = vadd.f32 %v167_v59, %v166_v57  ;;  %v258_v59 = vld [vmem:[#allocation9 + $0x7] sm:$0x1] }
 0x14e   :  { %v169_v62 = vrot.slane %v168_v61, 1  ;;  %v163_v63 = vadd.f32 %v162_v60, %v161_v58 }
 0x150   :  { %v170_v0 = vadd.f32 %v169_v62, %v168_v61  ;;  %v171_v1 = vmul.f32 0.125, %v163_v63 }
 0x152   :  { %v172_v2 = vmul.f32 0.125, %v170_v0  ;;  %v173_v3 = vmul.f32 %v171_v1, %v171_v1 }
 0x154   :  { %v174_v4 = vsub.f32 %v172_v2, %v173_v3  ;;  %v339_v3 = vld [vmem:[#allocation8 + $0x78] sm:$0xff] }
 0x155   :  { %357 = vmatpush.msra.mxu3 %v339_v3 }
 0x156   :  { %v175_v5 = vmax.f32 %v174_v4, 0.0  ;;  %v338_v4 = vld [vmem:[#allocation8 + $0x70] sm:$0xff] }
 0x157   :  { %358 = vmatpush.msra.mxu3 %v338_v4 }
 0x158   :  { %v177_v6 = vadd.f32 1e-05, %v175_v5  ;;  %v337_v5 = vld [vmem:[#allocation8 + $0x68] sm:$0xff] }
 0x159   :  { %359 = vmatpush.msra.mxu3 %v337_v5 }
 0x15a   :  { %404 = vrsqrt.f32 %v177_v6  ;;  %vm184_vm7 = vweird.f32 %v177_v6 }
 0x160   :  { %v405_v7 = vpop.eup %404 }
 0x161   :  { %v179_v8 = vmul.f32 %v405_v7, %v177_v6  ;;  %vm185_vm6 = vweird.f32 %v405_v7  ;;  %v336_v6 = vld [vmem:[#allocation8 + $0x60] sm:$0xff] }
 0x162   :  { %vm186_vm8 = vmor %vm184_vm7, %vm185_vm6  ;;  %360 = vmatpush.msra.mxu3 %v336_v6 }
 0x163   :  { %v180_v9 = vmul.f32 %v405_v7, %v179_v8 }
 0x165   :  { %v181_v10 = vmul.f32 0.5, %v180_v9 }
 0x167   :  { %v182_v11 = vsub.f32 1.5, %v181_v10 }
 0x169   :  { %v183_v13 = vmul.f32 %v405_v7, %v182_v11 }
 0x16b   :  { %v187_v14 = vsel %vm186_vm8, %v405_v7, %v183_v13  ;;  %v400_v7 = vld [vmem:[#allocation9 + $0x8] ss:$0 sm:$0xff] }
 0x16c   :  { %v188_v15 = vmul.f32 %v187_v14, %v176_v12 }
 0x16e   :  { %v190_v17 = vmul.f32 %v188_v15, %v171_v1  ;;  %v192_v18 = vperm.slane %v188_v15, 0 }
 0x170   :  { %v191_v19 = vsub.f32 %v189_v16, %v190_v17  ;;  %v193_v20 = vmul.f32 %v192_v18, %v156_v51 }
 0x172   :  { %v194_v21 = vperm.slane %v191_v19, 0 }
 0x174   :  { %v195_v22 = vadd.f32 %v194_v21, %v193_v20 }
 0x176   :  { %v196_v23 = vmax.f32 %v195_v22, 0.0 }
 0x178   :  { %386 = vmatmul.msk.f32.vlgmr.msra.gmra.mxu1 %vm134_vm5, %v196_v23 }
 0x1f5   :  { %v224_v29 = vpop.f32.mrf.mxu1 }
 0x1f6   :  { %v225_v30 = vadd.f32 %v399_v28, %v224_v29 }
 0x1f8   :  { %v227_v31 = vrot.slane %v225_v30, 4  ;;  %v233_v32 = vmul.f32 %v225_v30, %v225_v30 }
 0x1fa   :  { %v228_v33 = vadd.f32 %v227_v31, %v225_v30  ;;  %v234_v34 = vrot.slane %v233_v32, 4 }
 0x1fc   :  { %v229_v35 = vrot.slane %v228_v33, 2  ;;  %v235_v36 = vadd.f32 %v234_v34, %v233_v32  ;;  %v314_v34 = vld [vmem:[#allocation9 + $0x9] sm:$0x1] }
 0x1fe   :  { %v230_v37 = vadd.f32 %v229_v35, %v228_v33  ;;  %v236_v38 = vrot.slane %v235_v36, 2 }
 0x200   :  { %v231_v39 = vrot.slane %v230_v37, 1  ;;  %v237_v40 = vadd.f32 %v236_v38, %v235_v36  ;;  %v327_v38 = vld [vmem:[#allocation9 + $0xa] sm:$0x1] }
 0x202   :  { %v238_v41 = vrot.slane %v237_v40, 1  ;;  %v232_v42 = vadd.f32 %v231_v39, %v230_v37 }
 0x204   :  { %v239_v43 = vadd.f32 %v238_v41, %v237_v40  ;;  %v240_v44 = vmul.f32 0.125, %v232_v42 }
 0x206   :  { %v241_v45 = vmul.f32 0.125, %v239_v43  ;;  %v242_v46 = vmul.f32 %v240_v44, %v240_v44 }
 0x208   :  { %v243_v47 = vsub.f32 %v241_v45, %v242_v46  ;;  %v401_v46 = vld [vmem:[#allocation9 + $0xb] ss:$0 sm:$0xff] }
 0x20a   :  { %v244_v48 = vmax.f32 %v243_v47, 0.0 }
 0x20c   :  { %v246_v49 = vadd.f32 1e-05, %v244_v48 }
 0x20e   :  { %406 = vrsqrt.f32 %v246_v49  ;;  %vm253_vm10 = vweird.f32 %v246_v49 }
 0x214   :  { %v407_v50 = vpop.eup %406 }
 0x215   :  { %v248_v51 = vmul.f32 %v407_v50, %v246_v49  ;;  %vm254_vm9 = vweird.f32 %v407_v50 }
 0x216   :  { %vm255_vm11 = vmor %vm253_vm10, %vm254_vm9 }
 0x217   :  { %v249_v52 = vmul.f32 %v407_v50, %v248_v51 }
 0x219   :  { %v250_v53 = vmul.f32 0.5, %v249_v52 }
 0x21b   :  { %v251_v54 = vsub.f32 1.5, %v250_v53 }
 0x21d   :  { %v252_v56 = vmul.f32 %v407_v50, %v251_v54 }
 0x21f   :  { %v256_v57 = vsel %vm255_vm11, %v407_v50, %v252_v56 }
 0x220   :  { %v257_v58 = vmul.f32 %v256_v57, %v245_v55 }
 0x222   :  { %v259_v60 = vmul.f32 %v257_v58, %v240_v44  ;;  %v261_v61 = vperm.slane %v257_v58, 0 }
 0x224   :  { %v260_v62 = vsub.f32 %v258_v59, %v259_v60  ;;  %v262_v63 = vmul.f32 %v261_v61, %v225_v30 }
 0x226   :  { %v263_v0 = vperm.slane %v260_v62, 0 }
 0x228   :  { %v264_v1 = vadd.f32 %v263_v0, %v262_v63 }
 0x22a   :  { %v265_v2 = vmax.f32 %v264_v1, 0.0 }
 0x22c   :  { %387 = vmatmul.msk.f32.vlgmr.msra.gmra.mxu2 %vm134_vm5, %v265_v2 }
 0x2af   :  { %v293_v8 = vpop.f32.mrf.mxu2 }
 0x2b0   :  { %v294_v9 = vadd.f32 %v400_v7, %v293_v8 }
 0x2b2   :  { %v296_v10 = vrot.slane %v294_v9, 4  ;;  %v302_v11 = vmul.f32 %v294_v9, %v294_v9 }
 0x2b4   :  { %v297_v12 = vadd.f32 %v296_v10, %v294_v9  ;;  %v303_v13 = vrot.slane %v302_v11, 4 }
 0x2b6   :  { %v298_v14 = vrot.slane %v297_v12, 2  ;;  %v304_v15 = vadd.f32 %v303_v13, %v302_v11 }
 0x2b8   :  { %v299_v16 = vadd.f32 %v298_v14, %v297_v12  ;;  %v305_v17 = vrot.slane %v304_v15, 2 }
 0x2ba   :  { %v300_v18 = vrot.slane %v299_v16, 1  ;;  %v306_v19 = vadd.f32 %v305_v17, %v304_v15 }
 0x2bc   :  { %v307_v20 = vrot.slane %v306_v19, 1  ;;  %v301_v21 = vadd.f32 %v300_v18, %v299_v16 }
 0x2be   :  { %v308_v22 = vadd.f32 %v307_v20, %v306_v19  ;;  %v309_v23 = vmul.f32 0.125, %v301_v21 }
 0x2c0   :  { %v310_v24 = vmul.f32 0.125, %v308_v22  ;;  %v311_v25 = vmul.f32 %v309_v23, %v309_v23 }
 0x2c2   :  { %v312_v26 = vsub.f32 %v310_v24, %v311_v25 }
 0x2c4   :  { %v313_v27 = vmax.f32 %v312_v26, 0.0 }
 0x2c6   :  { %v315_v28 = vadd.f32 1e-05, %v313_v27 }
 0x2c8   :  { %408 = vrsqrt.f32 %v315_v28  ;;  %vm322_vm13 = vweird.f32 %v315_v28 }
 0x2ce   :  { %v409_v29 = vpop.eup %408 }
 0x2cf   :  { %v317_v30 = vmul.f32 %v409_v29, %v315_v28  ;;  %vm323_vm12 = vweird.f32 %v409_v29 }
 0x2d0   :  { %vm324_vm14 = vmor %vm322_vm13, %vm323_vm12 }
 0x2d1   :  { %v318_v31 = vmul.f32 %v409_v29, %v317_v30 }
 0x2d3   :  { %v319_v32 = vmul.f32 0.5, %v318_v31 }
 0x2d5   :  { %v320_v33 = vsub.f32 1.5, %v319_v32 }
 0x2d7   :  { %v321_v35 = vmul.f32 %v409_v29, %v320_v33 }
 0x2d9   :  { %v325_v36 = vsel %vm324_vm14, %v409_v29, %v321_v35 }
 0x2da   :  { %v326_v37 = vmul.f32 %v325_v36, %v314_v34 }
 0x2dc   :  { %v328_v39 = vmul.f32 %v326_v37, %v309_v23  ;;  %v330_v40 = vperm.slane %v326_v37, 0 }
 0x2de   :  { %v329_v41 = vsub.f32 %v327_v38, %v328_v39  ;;  %v331_v42 = vmul.f32 %v330_v40, %v294_v9 }
 0x2e0   :  { %v332_v43 = vperm.slane %v329_v41, 0 }
 0x2e2   :  { %v333_v44 = vadd.f32 %v332_v43, %v331_v42 }
 0x2e4   :  { %v334_v45 = vmax.f32 %v333_v44, 0.0 }
 0x2e6   :  { %388 = vmatmul.msk.f32.vlgmr.msra.gmra.mxu3 %vm134_vm5, %v334_v45 }
 0x369   :  { %v362_v47 = vpop.f32.mrf.mxu3 }
 0x36a   :  { %v363_v48 = vadd.f32 %v401_v46, %v362_v47 }
 0x36c   :  { %365 = vst.msk [vmem:[#allocation11] sm:$0xff] %vm79_vm0, %v363_v48 }
 0x36d   :  { %376 = dma.vmem_to_hbm [thread:$0]  %s372_s9, 128, %s374_s12, [#allocation5]  }
 0x36e   :  { %536 = dma.done.wait [#allocation5], 128  }
 0x36f   :  { %537 = vsyncadd [#allocation5], 4294967168 }
 0x370   :  { %381 = vsyncpa [#allocation4], 1 }
 0x371   :  { %382 = vsyncpa [#allocation7], 1 }
 0x372   :  { %383 = vsyncpa [#allocation10], 1 }
 0x373   :  { %384 = vsyncpa [#allocation5], 1 }

</bundles_post_ra>
